<compile_context>
chip_gen: v5e
topology: v5e:2x2
jax: 0.10.0
libtpu: 0.0.40
codegen_flags: <defaults>
</compile_context>

<pallas_src>
import jax
import jax.numpy as jnp
import numpy as np
from jax.experimental import pallas as pl
from jax.experimental.pallas import tpu as pltpu


# ------------------------------ Pallas kernel ------------------------------
def double_conv_kernel(x_ref, srow_ref, w1_ref, s1_ref, b1_ref,
                       w2_ref, s2_ref, b2_ref, o_ref):
    """Fused DoubleConvBlock forward for one image, lane-merged layout.

    x_ref   : (1, H, W*Cin)        input image, W and channels merged on lanes
    srow_ref: (3, H, H)            per-dy row selection (reflect in H folded in)
    w1_ref  : (3, W*Cin, W*Cout)   layer-1 banded taps (reflect in W folded in)
    s1/b1   : (1, W*Cout)          layer-1 folded BN scale / bias (f32)
    w2_ref  : (3, W*Cout, W*Cout)  layer-2 banded taps
    s2/b2   : (1, W*Cout)          layer-2 folded BN scale / bias (f32)
    o_ref   : (1, H, W*Cout)       lane-dense output slab
    """
    x = x_ref[0]                                        # (H, W*Cin)

    def conv_bn_relu(inp, w_ref, scale_ref, bias_ref):
        h = inp.shape[0]
        acc = jnp.zeros((h, w_ref.shape[-1]), jnp.float32)
        for dy in range(3):
            if dy == 1:
                z = inp                                  # centre tap: identity
            else:
                # Reflect row shift as a tiny (H, H) MXU matmul (exact 0/1).
                z = jnp.dot(srow_ref[dy], inp,
                            preferred_element_type=jnp.float32).astype(inp.dtype)
            # Banded tap: one fat, lane-dense MXU matmul per dy.
            acc = acc + jnp.dot(z, w_ref[dy],
                                preferred_element_type=jnp.float32)
        y = acc * scale_ref[...] + bias_ref[...]         # fused BN (f32)
        return jnp.maximum(y, 0.0)                       # ReLU

    y1 = conv_bn_relu(x, w1_ref, s1_ref, b1_ref)         # stays in VMEM
    y2 = conv_bn_relu(y1.astype(x.dtype), w2_ref, s2_ref, b2_ref)
    o_ref[0] = y2.astype(o_ref.dtype)                    # dense (H, W*Cout) store


# --------------------- host-side operand preprocessing ---------------------
def _reflect_index(i, n):
    """PyTorch / numpy 'reflect' (no edge repeat) index for pad=1."""
    if i < 0:
        return -i
    if i >= n:
        return 2 * n - 2 - i
    return i


def _build_banded_weights(w_hwio, width):
    """(3, 3, Cin, Cout) HWIO taps -> per-dy banded (W*Cin, W*Cout) matrices
    with the width-direction reflect padding folded in."""
    w = np.asarray(w_hwio, np.float64)
    _, _, cin, cout = w.shape
    banded = np.zeros((3, width * cin, width * cout), np.float64)
    for dy in range(3):
        for ow in range(width):
            for dx in range(3):
                iw = _reflect_index(ow + dx - 1, width)
                banded[dy,
                       iw * cin:(iw + 1) * cin,
                       ow * cout:(ow + 1) * cout] += w[dy, dx]
    return banded


def _build_row_shift(height):
    """Per-dy (H, H) row-selection matrices with height-direction reflect."""
    s = np.zeros((3, height, height), np.float64)
    for dy in range(3):
        for oh in range(height):
            s[dy, oh, _reflect_index(oh + dy - 1, height)] = 1.0
    return s


def fold_batchnorm(gamma, beta, running_mean, running_var, eps=1e-5):
    """Fold inference-mode BatchNorm2d into per-channel scale/bias."""
    scale = gamma / jnp.sqrt(running_var + eps)
    bias = beta - running_mean * scale
    return scale.astype(jnp.float32), bias.astype(jnp.float32)


# --------------------------------- wrappers ---------------------------------
def double_conv_block_forward_nhwc(x_nhwc, w1_hwio, scale1, bias1,
                                   w2_hwio, scale2, bias2):
    """Fused DoubleConvBlock forward, NHWC in / NHWC out, one pallas_call."""
    N, H, W, Cin = x_nhwc.shape
    Cout = w1_hwio.shape[-1]
    dt = x_nhwc.dtype

    # Host-built, grid-invariant operands (would be precomputed once per model
    # in a real deployment).
    srow = jnp.asarray(_build_row_shift(H), dt)
    w1b = jnp.asarray(_build_banded_weights(w1_hwio, W), dt)
    w2b = jnp.asarray(_build_banded_weights(w2_hwio, W), dt)
    s1 = jnp.tile(scale1.astype(jnp.float32), W).reshape(1, W * Cout)
    b1 = jnp.tile(bias1.astype(jnp.float32), W).reshape(1, W * Cout)
    s2 = jnp.tile(scale2.astype(jnp.float32), W).reshape(1, W * Cout)
    b2 = jnp.tile(bias2.astype(jnp.float32), W).reshape(1, W * Cout)

    # Free layout change: (N, H, W, Cin) and (N, H, W*Cin) share a linear layout.
    x2d = x_nhwc.reshape(N, H, W * Cin)

    out = pl.pallas_call(
        double_conv_kernel,
        out_shape=jax.ShapeDtypeStruct((N, H, W * Cout), dt),
        grid=(N,),
        in_specs=[
            pl.BlockSpec((1, H, W * Cin), lambda n: (n, 0, 0)),
            pl.BlockSpec((3, H, H), lambda n: (0, 0, 0)),
            pl.BlockSpec((3, W * Cin, W * Cout), lambda n: (0, 0, 0)),
            pl.BlockSpec((1, W * Cout), lambda n: (0, 0)),
            pl.BlockSpec((1, W * Cout), lambda n: (0, 0)),
            pl.BlockSpec((3, W * Cout, W * Cout), lambda n: (0, 0, 0)),
            pl.BlockSpec((1, W * Cout), lambda n: (0, 0)),
            pl.BlockSpec((1, W * Cout), lambda n: (0, 0)),
        ],
        out_specs=pl.BlockSpec((1, H, W * Cout), lambda n: (n, 0, 0)),
        compiler_params=pltpu.CompilerParams(
            dimension_semantics=("parallel",)),
    )(x2d, srow, w1b, s1, b1, w2b, s2, b2)
    return out.reshape(N, H, W, Cout)


def double_conv_block_forward(x_nchw, w1_hwio, scale1, bias1,
                              w2_hwio, scale2, bias2):
    """DoubleConvBlock forward, NCHW in / NCHW out (PyTorch layout parity)."""
    # TODO(synk): if the surrounding model keeps NHWC, call the *_nhwc entry
    # point directly and drop these two full-tensor transposes.
    x = jnp.transpose(x_nchw, (0, 2, 3, 1))
    y = double_conv_block_forward_nhwc(x, w1_hwio, scale1, bias1,
                                       w2_hwio, scale2, bias2)
    return jnp.transpose(y, (0, 3, 1, 2))


# ---------------------------- float64 reference ----------------------------
def _np_reference_double_conv(x_nchw, w1, s1, b1, w2, s2, b2):
    """Numpy float64 reference of the forward (inference-mode folded BN)."""
    def block(x, w, s, b):
        n, h, wd, _ = x.shape
        xp = np.pad(x, ((0, 0), (1, 1), (1, 1), (0, 0)), mode="reflect")
        y = np.zeros((n, h, wd, w.shape[-1]), np.float64)
        for dy in range(3):
            for dx in range(3):
                y += np.einsum("nhwc,co->nhwo",
                               xp[:, dy:dy + h, dx:dx + wd, :], w[dy, dx])
        y = y * s.reshape(1, 1, 1, -1) + b.reshape(1, 1, 1, -1)
        return np.maximum(y, 0.0)

    x = np.transpose(np.asarray(x_nchw, np.float64), (0, 2, 3, 1))
    x = block(x, np.asarray(w1, np.float64), np.asarray(s1, np.float64),
              np.asarray(b1, np.float64))
    x = block(x, np.asarray(w2, np.float64), np.asarray(s2, np.float64),
              np.asarray(b2, np.float64))
    return np.transpose(x, (0, 3, 1, 2))


# ----------------------------------- test -----------------------------------
if __name__ == "__main__":
    key = jax.random.PRNGKey(0)
    ks = jax.random.split(key, 11)

    # Small shapes consistent with the module: batch=2, in_ch=4, out_ch=8, 16x16.
    N, Cin, Cout, H, W = 2, 4, 8, 16, 16
    eps = 1e-5

    x = jax.random.normal(ks[0], (N, Cin, H, W), dtype=jnp.float32)       # NCHW

    # Conv weights in HWIO layout (3, 3, Cin, Cout); bias=False per the module.
    w1 = jax.random.normal(ks[1], (3, 3, Cin, Cout), jnp.float32) * 0.2
    w2 = jax.random.normal(ks[2], (3, 3, Cout, Cout), jnp.float32) * 0.2

    # BatchNorm2d parameters (inference-mode running stats).
    g1 = 1.0 + 0.1 * jax.random.normal(ks[3], (Cout,), jnp.float32)
    be1 = 0.1 * jax.random.normal(ks[4], (Cout,), jnp.float32)
    m1 = 0.1 * jax.random.normal(ks[5], (Cout,), jnp.float32)
    v1 = jax.random.uniform(ks[6], (Cout,), jnp.float32, 0.5, 1.5)
    g2 = 1.0 + 0.1 * jax.random.normal(ks[7], (Cout,), jnp.float32)
    be2 = 0.1 * jax.random.normal(ks[8], (Cout,), jnp.float32)
    m2 = 0.1 * jax.random.normal(ks[9], (Cout,), jnp.float32)
    v2 = jax.random.uniform(ks[10], (Cout,), jnp.float32, 0.5, 1.5)

    scale1, bias1 = fold_batchnorm(g1, be1, m1, v1, eps)
    scale2, bias2 = fold_batchnorm(g2, be2, m2, v2, eps)

    out = double_conv_block_forward(x, w1, scale1, bias1, w2, scale2, bias2)
    out = jax.block_until_ready(out)
    assert out.shape == (N, Cout, H, W), out.shape

    ref = _np_reference_double_conv(x, w1, scale1, bias1, w2, scale2, bias2)
    # Tight tolerance (all-f32 path with f32 accumulation vs float64 reference)
    # so layout / indexing bugs are not masked.
    np.testing.assert_allclose(np.asarray(out), ref, rtol=1e-5, atol=2e-5)

    print("KERNEL_OK")
</pallas_src>

<mosaic_0001>
module attributes {stable_mosaic.version = 11 : i64} {
  func.func @double_conv_kernel(%arg0: i32, %arg1: memref<1x16x64xf32, #tpu.memory_space<vmem>>, %arg2: memref<3x16x16xf32, #tpu.memory_space<vmem>>, %arg3: memref<3x64x128xf32, #tpu.memory_space<vmem>>, %arg4: memref<1x128xf32, #tpu.memory_space<vmem>>, %arg5: memref<1x128xf32, #tpu.memory_space<vmem>>, %arg6: memref<3x128x128xf32, #tpu.memory_space<vmem>>, %arg7: memref<1x128xf32, #tpu.memory_space<vmem>>, %arg8: memref<1x128xf32, #tpu.memory_space<vmem>>, %arg9: memref<1x16x128xf32, #tpu.memory_space<vmem>>) attributes {dimension_semantics = [#tpu.dimension_semantics<parallel>], iteration_bounds = array<i64: 2>, scalar_prefetch = 0 : i64, scratch_operands = 0 : i64, tpu.core_type = #tpu.core_type<tc>, window_params = [{transform_indices = @transform_0, window_bounds = array<i64: 1, 16, 64>}, {pipeline_mode = #tpu.pipeline_mode<synchronous>, transform_indices = @transform_1, window_bounds = array<i64: 3, 16, 16>}, {pipeline_mode = #tpu.pipeline_mode<synchronous>, transform_indices = @transform_2, window_bounds = array<i64: 3, 64, 128>}, {pipeline_mode = #tpu.pipeline_mode<synchronous>, transform_indices = @transform_3, window_bounds = array<i64: 1, 128>}, {pipeline_mode = #tpu.pipeline_mode<synchronous>, transform_indices = @transform_4, window_bounds = array<i64: 1, 128>}, {pipeline_mode = #tpu.pipeline_mode<synchronous>, transform_indices = @transform_5, window_bounds = array<i64: 3, 128, 128>}, {pipeline_mode = #tpu.pipeline_mode<synchronous>, transform_indices = @transform_6, window_bounds = array<i64: 1, 128>}, {pipeline_mode = #tpu.pipeline_mode<synchronous>, transform_indices = @transform_7, window_bounds = array<i64: 1, 128>}, {transform_indices = @transform_8, window_bounds = array<i64: 1, 16, 128>}]} {
    %c0 = arith.constant 0 : index
    %c0_0 = arith.constant 0 : index
    %c0_1 = arith.constant 0 : index
    %0 = vector.load %arg1[%c0, %c0_0, %c0_1] : memref<1x16x64xf32, #tpu.memory_space<vmem>>, vector<1x16x64xf32>
    %1 = vector.shape_cast %0 : vector<1x16x64xf32> to vector<16x64xf32>
    %cst = arith.constant 0.000000e+00 : f32
    %2 = vector.broadcast %cst : f32 to vector<16x128xf32>
    %c0_2 = arith.constant 0 : index
    %c0_3 = arith.constant 0 : index
    %c0_4 = arith.constant 0 : index
    %3 = vector.load %arg2[%c0_2, %c0_3, %c0_4] : memref<3x16x16xf32, #tpu.memory_space<vmem>>, vector<1x16x16xf32>
    %4 = vector.shape_cast %3 : vector<1x16x16xf32> to vector<16x16xf32>
    %cst_5 = arith.constant dense<0.000000e+00> : vector<16x64xf32>
    %5 = tpu.matmul %4, %1, %cst_5 {dimension_numbers = #tpu.dot_dimension_numbers<[1], [0], [0], [1], [0, 0, 1, 1], [], []>} : vector<16x16xf32>, vector<16x64xf32>, vector<16x64xf32> -> vector<16x64xf32>
    %c0_6 = arith.constant 0 : index
    %c0_7 = arith.constant 0 : index
    %c0_8 = arith.constant 0 : index
    %6 = vector.load %arg3[%c0_6, %c0_7, %c0_8] : memref<3x64x128xf32, #tpu.memory_space<vmem>>, vector<1x64x128xf32>
    %7 = vector.shape_cast %6 : vector<1x64x128xf32> to vector<64x128xf32>
    %cst_9 = arith.constant dense<0.000000e+00> : vector<16x128xf32>
    %8 = tpu.matmul %5, %7, %cst_9 {dimension_numbers = #tpu.dot_dimension_numbers<[1], [0], [0], [1], [0, 0, 1, 1], [], []>} : vector<16x64xf32>, vector<64x128xf32>, vector<16x128xf32> -> vector<16x128xf32>
    %9 = arith.addf %2, %8 : vector<16x128xf32>
    %c1 = arith.constant 1 : index
    %c0_10 = arith.constant 0 : index
    %c0_11 = arith.constant 0 : index
    %10 = vector.load %arg3[%c1, %c0_10, %c0_11] : memref<3x64x128xf32, #tpu.memory_space<vmem>>, vector<1x64x128xf32>
    %11 = vector.shape_cast %10 : vector<1x64x128xf32> to vector<64x128xf32>
    %cst_12 = arith.constant dense<0.000000e+00> : vector<16x128xf32>
    %12 = tpu.matmul %1, %11, %cst_12 {dimension_numbers = #tpu.dot_dimension_numbers<[1], [0], [0], [1], [0, 0, 1, 1], [], []>} : vector<16x64xf32>, vector<64x128xf32>, vector<16x128xf32> -> vector<16x128xf32>
    %13 = arith.addf %9, %12 : vector<16x128xf32>
    %c2 = arith.constant 2 : index
    %c0_13 = arith.constant 0 : index
    %c0_14 = arith.constant 0 : index
    %14 = vector.load %arg2[%c2, %c0_13, %c0_14] : memref<3x16x16xf32, #tpu.memory_space<vmem>>, vector<1x16x16xf32>
    %15 = vector.shape_cast %14 : vector<1x16x16xf32> to vector<16x16xf32>
    %cst_15 = arith.constant dense<0.000000e+00> : vector<16x64xf32>
    %16 = tpu.matmul %15, %1, %cst_15 {dimension_numbers = #tpu.dot_dimension_numbers<[1], [0], [0], [1], [0, 0, 1, 1], [], []>} : vector<16x16xf32>, vector<16x64xf32>, vector<16x64xf32> -> vector<16x64xf32>
    %c2_16 = arith.constant 2 : index
    %c0_17 = arith.constant 0 : index
    %c0_18 = arith.constant 0 : index
    %17 = vector.load %arg3[%c2_16, %c0_17, %c0_18] : memref<3x64x128xf32, #tpu.memory_space<vmem>>, vector<1x64x128xf32>
    %18 = vector.shape_cast %17 : vector<1x64x128xf32> to vector<64x128xf32>
    %cst_19 = arith.constant dense<0.000000e+00> : vector<16x128xf32>
    %19 = tpu.matmul %16, %18, %cst_19 {dimension_numbers = #tpu.dot_dimension_numbers<[1], [0], [0], [1], [0, 0, 1, 1], [], []>} : vector<16x64xf32>, vector<64x128xf32>, vector<16x128xf32> -> vector<16x128xf32>
    %20 = arith.addf %13, %19 : vector<16x128xf32>
    %c0_20 = arith.constant 0 : index
    %c0_21 = arith.constant 0 : index
    %21 = vector.load %arg4[%c0_20, %c0_21] : memref<1x128xf32, #tpu.memory_space<vmem>>, vector<1x128xf32>
    %22 = vector.broadcast %21 : vector<1x128xf32> to vector<16x128xf32>
    %23 = arith.mulf %20, %22 : vector<16x128xf32>
    %c0_22 = arith.constant 0 : index
    %c0_23 = arith.constant 0 : index
    %24 = vector.load %arg5[%c0_22, %c0_23] : memref<1x128xf32, #tpu.memory_space<vmem>>, vector<1x128xf32>
    %25 = vector.broadcast %24 : vector<1x128xf32> to vector<16x128xf32>
    %26 = arith.addf %23, %25 : vector<16x128xf32>
    %cst_24 = arith.constant 0.000000e+00 : f32
    %27 = vector.broadcast %cst_24 : f32 to vector<16x128xf32>
    %28 = arith.maximumf %26, %27 : vector<16x128xf32>
    %cst_25 = arith.constant 0.000000e+00 : f32
    %29 = vector.broadcast %cst_25 : f32 to vector<16x128xf32>
    %c0_26 = arith.constant 0 : index
    %c0_27 = arith.constant 0 : index
    %c0_28 = arith.constant 0 : index
    %30 = vector.load %arg2[%c0_26, %c0_27, %c0_28] : memref<3x16x16xf32, #tpu.memory_space<vmem>>, vector<1x16x16xf32>
    %31 = vector.shape_cast %30 : vector<1x16x16xf32> to vector<16x16xf32>
    %cst_29 = arith.constant dense<0.000000e+00> : vector<16x128xf32>
    %32 = tpu.matmul %31, %28, %cst_29 {dimension_numbers = #tpu.dot_dimension_numbers<[1], [0], [0], [1], [0, 0, 1, 1], [], []>} : vector<16x16xf32>, vector<16x128xf32>, vector<16x128xf32> -> vector<16x128xf32>
    %c0_30 = arith.constant 0 : index
    %c0_31 = arith.constant 0 : index
    %c0_32 = arith.constant 0 : index
    %33 = vector.load %arg6[%c0_30, %c0_31, %c0_32] : memref<3x128x128xf32, #tpu.memory_space<vmem>>, vector<1x128x128xf32>
    %34 = vector.shape_cast %33 : vector<1x128x128xf32> to vector<128x128xf32>
    %cst_33 = arith.constant dense<0.000000e+00> : vector<16x128xf32>
    %35 = tpu.matmul %32, %34, %cst_33 {dimension_numbers = #tpu.dot_dimension_numbers<[1], [0], [0], [1], [0, 0, 1, 1], [], []>} : vector<16x128xf32>, vector<128x128xf32>, vector<16x128xf32> -> vector<16x128xf32>
    %36 = arith.addf %29, %35 : vector<16x128xf32>
    %c1_34 = arith.constant 1 : index
    %c0_35 = arith.constant 0 : index
    %c0_36 = arith.constant 0 : index
    %37 = vector.load %arg6[%c1_34, %c0_35, %c0_36] : memref<3x128x128xf32, #tpu.memory_space<vmem>>, vector<1x128x128xf32>
    %38 = vector.shape_cast %37 : vector<1x128x128xf32> to vector<128x128xf32>
    %cst_37 = arith.constant dense<0.000000e+00> : vector<16x128xf32>
    %39 = tpu.matmul %28, %38, %cst_37 {dimension_numbers = #tpu.dot_dimension_numbers<[1], [0], [0], [1], [0, 0, 1, 1], [], []>} : vector<16x128xf32>, vector<128x128xf32>, vector<16x128xf32> -> vector<16x128xf32>
    %40 = arith.addf %36, %39 : vector<16x128xf32>
    %c2_38 = arith.constant 2 : index
    %c0_39 = arith.constant 0 : index
    %c0_40 = arith.constant 0 : index
    %41 = vector.load %arg2[%c2_38, %c0_39, %c0_40] : memref<3x16x16xf32, #tpu.memory_space<vmem>>, vector<1x16x16xf32>
    %42 = vector.shape_cast %41 : vector<1x16x16xf32> to vector<16x16xf32>
    %cst_41 = arith.constant dense<0.000000e+00> : vector<16x128xf32>
    %43 = tpu.matmul %42, %28, %cst_41 {dimension_numbers = #tpu.dot_dimension_numbers<[1], [0], [0], [1], [0, 0, 1, 1], [], []>} : vector<16x16xf32>, vector<16x128xf32>, vector<16x128xf32> -> vector<16x128xf32>
    %c2_42 = arith.constant 2 : index
    %c0_43 = arith.constant 0 : index
    %c0_44 = arith.constant 0 : index
    %44 = vector.load %arg6[%c2_42, %c0_43, %c0_44] : memref<3x128x128xf32, #tpu.memory_space<vmem>>, vector<1x128x128xf32>
    %45 = vector.shape_cast %44 : vector<1x128x128xf32> to vector<128x128xf32>
    %cst_45 = arith.constant dense<0.000000e+00> : vector<16x128xf32>
    %46 = tpu.matmul %43, %45, %cst_45 {dimension_numbers = #tpu.dot_dimension_numbers<[1], [0], [0], [1], [0, 0, 1, 1], [], []>} : vector<16x128xf32>, vector<128x128xf32>, vector<16x128xf32> -> vector<16x128xf32>
    %47 = arith.addf %40, %46 : vector<16x128xf32>
    %c0_46 = arith.constant 0 : index
    %c0_47 = arith.constant 0 : index
    %48 = vector.load %arg7[%c0_46, %c0_47] : memref<1x128xf32, #tpu.memory_space<vmem>>, vector<1x128xf32>
    %49 = vector.broadcast %48 : vector<1x128xf32> to vector<16x128xf32>
    %50 = arith.mulf %47, %49 : vector<16x128xf32>
    %c0_48 = arith.constant 0 : index
    %c0_49 = arith.constant 0 : index
    %51 = vector.load %arg8[%c0_48, %c0_49] : memref<1x128xf32, #tpu.memory_space<vmem>>, vector<1x128xf32>
    %52 = vector.broadcast %51 : vector<1x128xf32> to vector<16x128xf32>
    %53 = arith.addf %50, %52 : vector<16x128xf32>
    %cst_50 = arith.constant 0.000000e+00 : f32
    %54 = vector.broadcast %cst_50 : f32 to vector<16x128xf32>
    %55 = arith.maximumf %53, %54 : vector<16x128xf32>
    %c0_51 = arith.constant 0 : index
    %c0_52 = arith.constant 0 : index
    %c0_53 = arith.constant 0 : index
    %56 = vector.load %arg9[%c0_51, %c0_52, %c0_53] : memref<1x16x128xf32, #tpu.memory_space<vmem>>, vector<1x16x128xf32>
    %57 = vector.shape_cast %56 : vector<1x16x128xf32> to vector<16x128xf32>
    %58 = vector.shape_cast %55 : vector<16x128xf32> to vector<1x16x128xf32>
    tpu.vector_store %arg9[%c0_51, %c0_52, %c0_53], %58 {strides = array<i32>} : memref<1x16x128xf32, #tpu.memory_space<vmem>>, vector<1x16x128xf32>,
    return
  }
  func.func @transform_0(%arg0: i32) -> (i32, i32, i32) {
    %c0_i32 = arith.constant 0 : i32
    %c0_i32_0 = arith.constant 0 : i32
    %c0_i32_1 = arith.constant 0 : i32
    return %arg0, %c0_i32, %c0_i32_0 : i32, i32, i32
  }
  func.func @transform_1(%arg0: i32) -> (i32, i32, i32) {
    %c0_i32 = arith.constant 0 : i32
    %c0_i32_0 = arith.constant 0 : i32
    %c0_i32_1 = arith.constant 0 : i32
    %c0_i32_2 = arith.constant 0 : i32
    return %c0_i32, %c0_i32_0, %c0_i32_1 : i32, i32, i32
  }
  func.func @transform_2(%arg0: i32) -> (i32, i32, i32) {
    %c0_i32 = arith.constant 0 : i32
    %c0_i32_0 = arith.constant 0 : i32
    %c0_i32_1 = arith.constant 0 : i32
    %c0_i32_2 = arith.constant 0 : i32
    return %c0_i32, %c0_i32_0, %c0_i32_1 : i32, i32, i32
  }
  func.func @transform_3(%arg0: i32) -> (i32, i32) {
    %c0_i32 = arith.constant 0 : i32
    %c0_i32_0 = arith.constant 0 : i32
    %c0_i32_1 = arith.constant 0 : i32
    return %c0_i32, %c0_i32_0 : i32, i32
  }
  func.func @transform_4(%arg0: i32) -> (i32, i32) {
    %c0_i32 = arith.constant 0 : i32
    %c0_i32_0 = arith.constant 0 : i32
    %c0_i32_1 = arith.constant 0 : i32
    return %c0_i32, %c0_i32_0 : i32, i32
  }
  func.func @transform_5(%arg0: i32) -> (i32, i32, i32) {
    %c0_i32 = arith.constant 0 : i32
    %c0_i32_0 = arith.constant 0 : i32
    %c0_i32_1 = arith.constant 0 : i32
    %c0_i32_2 = arith.constant 0 : i32
    return %c0_i32, %c0_i32_0, %c0_i32_1 : i32, i32, i32
  }
  func.func @transform_6(%arg0: i32) -> (i32, i32) {
    %c0_i32 = arith.constant 0 : i32
    %c0_i32_0 = arith.constant 0 : i32
    %c0_i32_1 = arith.constant 0 : i32
    return %c0_i32, %c0_i32_0 : i32, i32
  }
  func.func @transform_7(%arg0: i32) -> (i32, i32) {
    %c0_i32 = arith.constant 0 : i32
    %c0_i32_0 = arith.constant 0 : i32
    %c0_i32_1 = arith.constant 0 : i32
    return %c0_i32, %c0_i32_0 : i32, i32
  }
  func.func @transform_8(%arg0: i32) -> (i32, i32, i32) {
    %c0_i32 = arith.constant 0 : i32
    %c0_i32_0 = arith.constant 0 : i32
    %c0_i32_1 = arith.constant 0 : i32
    return %arg0, %c0_i32, %c0_i32_0 : i32, i32, i32
  }
}

</mosaic_0001>

<bundles_post_ra>
// kernel: tpu_custom_call.1
= control target key start
LH: loop header
LB: loop body
LE: loop exit
PB: predicated region body
PF: predicated region fallthrough
CT: control target
= control target key end

     0   :  { %s1463_s0 = inlined_call_operand.hbm [shape: f32[2,16,64], index: 0, kind: input, shape index: {}]   ;;  %s1464_s1 = inlined_call_operand.hbm [shape: f32[3,16,16], index: 1, kind: input, shape index: {}]   ;;  %s1465_s2 = inlined_call_operand.hbm [shape: f32[3,64,128], index: 2, kind: input, shape index: {}]   ;;  %s1466_s3 = inlined_call_operand.vmem [shape: f32[1,128], index: 3, kind: input, shape index: {}]   ;;  %s1467_s4 = inlined_call_operand.vmem [shape: f32[1,128], index: 4, kind: input, shape index: {}]   ;;  %s1468_s5 = inlined_call_operand.hbm [shape: f32[3,128,128], index: 5, kind: input, shape index: {}]   ;;  %s1469_s6 = inlined_call_operand.vmem [shape: f32[1,128], index: 6, kind: input, shape index: {}]   ;;  %s1470_s7 = inlined_call_operand.vmem [shape: f32[1,128], index: 7, kind: input, shape index: {}]   ;;  %s1471_s8 = inlined_call_operand.hbm [shape: f32[2,16,128], index: 8, kind: output, shape index: {}]  }
   0x1   :  { %1474 = sst [smem:[#allocation15_spill]] %s1464_s1 }
   0x2   :  { %1475 = sst [smem:[#allocation16_spill]] %s1465_s2 }
   0x3   :  { %13 = vsyncpa [#allocation3], 0 }
   0x4   :  { %15 = vsyncpa [#allocation3 + $0x1], 0 }
   0x5   :  { %16 = vsyncpa [#allocation6], 0 }
   0x6   :  { %17 = vsyncpa [#allocation9], 0 }
   0x7   :  { %18 = vsyncpa [#allocation4], 0 }
   0x8   :  { %20 = vsyncpa [#allocation4 + $0x1], 0  ;;  %s1242_s27 = smov 0   ;;  %s1244_s28 = smov 0  }
   0x9   :  { %s1246_s29 = smov 0   ;;  %s1248_s30 = smov 0  }
   0xa LB: > { %s1263_s9 = sadd.s32 4294967295, %s1188_s30   ;;  %s873_s10 = sadd.s32 4294967294, %s1188_s30   ;;  %s1188_s30 = sphi %s1248_s30, %s1490_s30   ;;  %s1184_s29 = sphi %s1246_s29, %s1489_s29   ;;  %s1180_s28 = sphi %s1244_s28, %s1488_s28   ;;  %s1176_s27 = sphi %s1242_s27, %s1487_s27  }
   0xb   : > { %p46_p0 = scmp.ne.s32.totalorder %s1180_s28, %s1176_s27  ;;  %p47_p1 = scmp.eq.s32.totalorder %s1263_s9, 0 }
   0xc   : > { %p217_p2 = scmp.eq.s32.totalorder %s1263_s9, 1  ;;  %p223_p3 = scmp.eq.s32.totalorder %s873_s10, 1 }
   0xd   : > { %p1272_p4 = por %p47_p1, %p46_p0  ;;  %p874_p5 = scmp.ge.s32.totalorder %s1188_s30, 1 }
   0xe   : > { %p1277_p6 = por %p223_p3, %p46_p0  ;;  %p230_p7 = scmp.lt.s32.totalorder %s1188_s30, 3 }
   0xf   : > { %s1478_s1 = sld [smem:[#allocation15_spill]]  ;;  %s1190_s17 = smov [#allocation5]  }
  0x10   : > { %p1285_p8 = pnand %p874_p5, %p230_p7  ;;  %s243_s18 = sshll.u32 %s1190_s17, 4  ;;  %s244_s18 = int_to_ptr.vmem [resolvable:$true] %s243_s18 }
  0x11   : > { %s1481_s2 = sld [smem:[#allocation16_spill]]  ;;  %s1472_s23 = smov 128  }
  0x12   : > { %p925_p9 = pneg %p1285_p8  ;;  %s1473_s24 = smov 8  }
  0x13   : > { %s1193_s25 = smov [#allocation7]   ;;  %s275_s14 = sshll.u32 %s1468_s5, 4  ;;  %s276_s14 = int_to_ptr.hbm [resolvable:$true] %s275_s14 }
  0x14   : > { %p1293_p10 = pnand %p925_p9, %p47_p1  ;;  %s257_s26 = sshll.u32 %s1193_s25, 4  ;;  %s258_s26 = int_to_ptr.vmem [resolvable:$true] %s257_s26 }
  0x15   : > { %s241_s15 = sshll.u32 %s1478_s1, 4  ;;  %s33_s21 = sadd.s32 1, %s1184_s29  ;;  %s242_s15 = int_to_ptr.hbm [resolvable:$true] %s241_s15 }
  0x16   : > { %928 = dma.hbm_to_vmem [thread:$0]  (!%p1293_p10), %s242_s15, 768, %s244_s18, [#allocation6], %s1472_s23, %s1472_s23, %s1473_s24  }
  0x17   : > { %s255_s22 = sshll.u32 %s1481_s2, 4  ;;  %s1194_s15 = smov [#allocation8]   ;;  %s256_s22 = int_to_ptr.hbm [resolvable:$true] %s255_s22 }
  0x18   : > { %931 = dma.hbm_to_vmem [thread:$0]  (!%p1293_p10), %s256_s22, 3072, %s258_s26, [#allocation6], %s1472_s23, %s1472_s23, %s1473_s24  }
  0x19   : > { %s277_s17 = sshll.u32 %s1194_s15, 4  ;;  %s1315_s18 = sadd.s32 1, %s1188_s30   ;;  %s278_s17 = int_to_ptr.vmem [resolvable:$true] %s277_s17 }
  0x1a   : > { %934 = dma.hbm_to_vmem [thread:$0]  (!%p1293_p10), %s276_s14, 6144, %s278_s17, [#allocation9], %s1472_s23, %s1472_s23, %s1473_s24  }
  0x1b   : > { %s30_s20 = ssub.s32 %s1188_s30, %s1315_s18  ;;  %p40_p13 = scmp.ne.s32.totalorder %s1184_s29, %s1180_s28 }
  0x1c   : > { %p31_p12 = scmp.eq.s32.totalorder %s30_s20, 0  ;;  %p41_p0 = scmp.eq.s32.totalorder %s1188_s30, 0 }
  0x1d   : > { %p1333_p3 = por %p217_p2, %p40_p13  ;;  %p946_p5 = scmp.lt.s32.totalorder %s1188_s30, 2 }
  0x1e   : > { %s1329_s25 = scalar_select %p31_p12, %s1184_s29, %s33_s21  }
  0x1f   : > { %s297_s26 = sand.u32 1, %s1184_s29   ;;  %s907_s19 = sshll.u32 %s1188_s30, 4 }
  0x20   : > { %p42_p7 = por %p41_p0, %p40_p13  ;;  %s879_s10 = sshll.u32 %s297_s26, 4 }
  0x21   : > { %s306_s14 = scalar_lea.hbm %s1463_s0, %s907_s19  ;;  %s301_s20 = scalar_lea.vmem [#allocation2], %s879_s10 }
  0x22   : > { %s307_s17 = sshll.u32 %s306_s14, 4  ;;  %s309_s23 = sshll.u32 %s301_s20, 4  ;;  %s308_s17 = int_to_ptr.hbm [resolvable:$true] %s307_s17  ;;  %s310_s23 = int_to_ptr.vmem [resolvable:$true] %s309_s23 }
  0x23   : > { %p1343_p9 = pnand %p946_p5, %p42_p7  ;;  %s298_s24 = scalar_lea.sflag [#allocation3], %s297_s26 }
  0x24   : > { %s1084_s1 = sshra.s32 %s308_s17, 4  ;;  %s1091_s10 = scalar_lea.hbm %s1463_s0, 32  ;;  %s1085_s1 = int_to_ptr.hbm [resolvable:$true] %s1084_s1 }
  0x25   : > { %s1086_s2 = scalar_lea.hbm %s1085_s1, 16  ;;  %p1088_p10 = pneg %p1343_p9 }
  0x26   : > { %p1087_p2 = scmp.ne.s32.totalorder %s1085_s1, %s1086_s2  ;;  %p1092_p0 = scmp.lt.s32.totalorder %s1085_s1, %s1463_s0 }
  0x27   : > { %p1093_p5 = scmp.lt.s32.totalorder %s1091_s10, %s1086_s2 }
  0x28   : > { %p1089_p12 = pnand %p1088_p10, %p1087_p2 }
  0x29   : > { %p1094_p7 = por %p1093_p5, %p1092_p0 }
  0x2a   : > { %p1090_p13 = pneg %p1089_p12 }
  0x2c   : > { %p1095_p11 = pnand %p1094_p7, %p1090_p13 }
  0x2e   : > { %1098 = shalt.err (!%p1095_p11)
}
  0x2f   : > { %s1484_s26 = smov 8   ;;  %s1485_s20 = smov 128  }
  0x30   : > { %938 = dma.hbm_to_vmem [thread:$0]  (!%p1343_p9), %s308_s17, 256, %s310_s23, %s298_s24, %s1485_s20, %s1485_s20, %s1484_s26  }
  0x31   : > { %321 = sbr.rel (%p1285_p8) target bundleno = 628 (0x274), region = 52  ;;  %s1363_s19 = sand.u32 (!%p1285_p8), 1, %s1180_s28  }
  0x32   : > { %s883_s1 = sshll.u32 (!%p1285_p8), %s1363_s19, 4  ;;  %s324_s2 = scalar_lea.sflag (!%p1285_p8), [#allocation3], %s1363_s19 }
  0x33   : > { %s327_s13 = scalar_lea.vmem (!%p1285_p8), [#allocation2], %s883_s1 }
  0x36   : > { %1159 = dma.done.wait (%p1272_p4), %s324_s2, 256  }
  0x37   : > { %1161 = vsyncadd (%p1272_p4), %s324_s2, 4294967040 }
  0x38   : > { %1163 = dma.done.wait (%p47_p1), [#allocation6], 3840  }
  0x39   : > { %1165 = vsyncadd (%p47_p1), [#allocation6], 4294963456 }
  0x3a   : > { %1167 = dma.done.wait (%p47_p1), [#allocation9], 6144  }
  0x3b   : > { %1169 = vsyncadd (%p47_p1), [#allocation9], 4294961152  ;;  %v1381_v0 = vld [vmem:[%s327_s13 + $0x8] sm:$0xff]  ;;  %v376_v1 = vld [vmem:[%s327_s13] sm:$0xff]  ;;  %vm380_vm0 = vcmask 130048   ;;  %vm427_vm1 = vcmask 523264  }
  0x3c   : > { %401 = vmatpush.msra.mxu0 %v1381_v0  ;;  %509 = vmatpush.msra.mxu3 %v1381_v0  ;;  %v1385_v2 = vld [vmem:[#allocation5] sm:$0xff]  ;;  %v417_v4 = vld [vmem:[#allocation7 + $0x38] sm:$0xff]  ;;  %v415_v9 = vld [vmem:[#allocation7 + $0x28] sm:$0xff]  ;;  %s908_s14 = sshll.u32 %s1263_s9, 4  ;;  %s375_s13 = scalar_lea.vmem [#allocation10], %s883_s1 }
  0x3d   : > { %v1387_v3 = vld [vmem:[#allocation5 + $0x20] sm:$0xff]  ;;  %v426_v5 = vld [vmem:[#allocation7 + $0x78] sm:$0xff]  ;;  %471 = vmatpush.msra.mxu2 %v417_v4  ;;  %v424_v11 = vld [vmem:[#allocation7 + $0x68] sm:$0xff]  ;;  %s767_s2 = scalar_lea.hbm %s1471_s8, %s908_s14  ;;  %s768_s11 = sshll.u32 %s375_s13, 4  ;;  %s769_s11 = int_to_ptr.vmem [resolvable:$true] %s768_s11 }
  0x3e   : > { %402 = vmatpush.msra.mxu0 %v376_v1  ;;  %510 = vmatpush.msra.mxu3 %v376_v1  ;;  %v416_v6 = vld [vmem:[#allocation7 + $0x30] sm:$0xff]  ;;  %v526_v8 = vld [vmem:[#allocation7 + $0xb8] sm:$0xff]  ;;  %v524_v12 = vld [vmem:[#allocation7 + $0xa8] sm:$0xff]  ;;  %s770_s16 = sshll.u32 %s767_s2, 4  ;;  %s756_s9 = scalar_lea.sflag [#allocation4], %s1363_s19  ;;  %s771_s16 = int_to_ptr.hbm [resolvable:$true] %s770_s16 }
  0x3f   : > { %888 = vmatmul.msk.f32.vlgmr.msra.gmra.mxu0 %vm380_vm0, %v1385_v2  ;;  %894 = vmatmul.msk.f32.vlgmr.msra.gmra.mxu3 %vm380_vm0, %v1387_v3  ;;  %v425_v7 = vld [vmem:[#allocation7 + $0x70] sm:$0xff]  ;;  %v414_v13 = vld [vmem:[#allocation7 + $0x20] sm:$0xff]  ;;  %v1393_v15 = vld [vmem:[#allocation5 + $0x8] sm:$0xff]  ;;  %s1128_s23 = sshra.s32 %s771_s16, 4  ;;  %s1134_s21 = scalar_lea.hbm %s1471_s8, 32  ;;  %s1129_s23 = int_to_ptr.hbm [resolvable:$true] %s1128_s23 }
  0x40   : > { %442 = vmatpush.msra.mxu1 %v426_v5  ;;  %v525_v10 = vld [vmem:[#allocation7 + $0xb0] sm:$0xff]  ;;  %541 = vmatpush.msrb.mxu0 %v526_v8  ;;  %v423_v14 = vld [vmem:[#allocation7 + $0x60] sm:$0xff]  ;;  %v1395_v16 = vld [vmem:[#allocation5 + $0x28] sm:$0xff]  ;;  %s1130_s24 = scalar_lea.hbm %s1129_s23, 16  ;;  %p1135_p11 = scmp.lt.s32.totalorder %s1129_s23, %s1471_s8 }
  0x41   : > { %472 = vmatpush.msra.mxu2 %v416_v6  ;;  %v413_v17 = vld [vmem:[#allocation7 + $0x18] sm:$0xff]  ;;  %v412_v18 = vld [vmem:[#allocation7 + $0x10] sm:$0xff]  ;;  %v411_v19 = vld [vmem:[#allocation7 + $0x8] sm:$0xff]  ;;  %p1131_p1 = scmp.ne.s32.totalorder %s1129_s23, %s1130_s24  ;;  %p1136_p9 = scmp.lt.s32.totalorder %s1134_s21, %s1130_s24 }
  0x42   : > { %443 = vmatpush.msra.mxu1 %v425_v7  ;;  %542 = vmatpush.msrb.mxu0 %v525_v10  ;;  %v422_v20 = vld [vmem:[#allocation7 + $0x58] sm:$0xff]  ;;  %v410_v21 = vld [vmem:[#allocation7] sm:$0xff]  ;;  %v421_v23 = vld [vmem:[#allocation7 + $0x50] sm:$0xff] }
  0x43   : > { %473 = vmatpush.msra.mxu2 %v415_v9  ;;  %v523_v22 = vld [vmem:[#allocation7 + $0xa0] sm:$0xff]  ;;  %v522_v24 = vld [vmem:[#allocation7 + $0x98] sm:$0xff]  ;;  %v420_v25 = vld [vmem:[#allocation7 + $0x48] sm:$0xff]  ;;  %p1132_p4 = pnand %p1131_p1, %p1333_p3  ;;  %p1137_p2 = por %p1136_p9, %p1135_p11 }
  0x44   : > { %444 = vmatpush.msra.mxu1 %v424_v11  ;;  %543 = vmatpush.msrb.mxu0 %v524_v12  ;;  %v521_v26 = vld [vmem:[#allocation7 + $0x90] sm:$0xff]  ;;  %v419_v27 = vld [vmem:[#allocation7 + $0x40] sm:$0xff]  ;;  %v520_v28 = vld [vmem:[#allocation7 + $0x88] sm:$0xff] }
  0x45   : > { %474 = vmatpush.msra.mxu2 %v414_v13  ;;  %v519_v29 = vld [vmem:[#allocation7 + $0x80] sm:$0xff]  ;;  %v627_v30 = vld [vmem:[#allocation8 + $0xf8] sm:$0xff]  ;;  %v626_v31 = vld [vmem:[#allocation8 + $0xf0] sm:$0xff]  ;;  %p1133_p8 = pneg %p1132_p4 }
  0x46   : > { %445 = vmatpush.msra.mxu1 %v423_v14  ;;  %544 = vmatpush.msrb.mxu0 %v523_v22  ;;  %v625_v32 = vld [vmem:[#allocation8 + $0xe8] sm:$0xff]  ;;  %v624_v33 = vld [vmem:[#allocation8 + $0xe0] sm:$0xff]  ;;  %v623_v34 = vld [vmem:[#allocation8 + $0xd8] sm:$0xff] }
  0x47   : > { %889 = vmatmul.msk.f32.gmra.mxu0 %vm380_vm0, %v1393_v15  ;;  %895 = vmatmul.msk.f32.gmra.mxu3 %vm380_vm0, %v1395_v16  ;;  %v622_v35 = vld [vmem:[#allocation8 + $0xd0] sm:$0xff]  ;;  %v621_v36 = vld [vmem:[#allocation8 + $0xc8] sm:$0xff]  ;;  %v620_v37 = vld [vmem:[#allocation8 + $0xc0] sm:$0xff]  ;;  %p1138_p10 = pnand %p1137_p2, %p1133_p8 }
  0x48   : > { %475 = vmatpush.msra.mxu2 %v413_v17  ;;  %446 = vmatpush.msra.mxu1 %v422_v20  ;;  %v619_v38 = vld [vmem:[#allocation8 + $0xb8] sm:$0xff]  ;;  %v618_v39 = vld [vmem:[#allocation8 + $0xb0] sm:$0xff]  ;;  %v617_v44 = vld [vmem:[#allocation8 + $0xa8] sm:$0xff] }
  0x49   : > { %545 = vmatpush.msrb.mxu0 %v522_v24  ;;  %v616_v45 = vld [vmem:[#allocation8 + $0xa0] sm:$0xff]  ;;  %v615_v46 = vld [vmem:[#allocation8 + $0x98] sm:$0xff]  ;;  %v614_v47 = vld [vmem:[#allocation8 + $0x90] sm:$0xff] }
  0x4a   : > { %476 = vmatpush.msra.mxu2 %v412_v18  ;;  %447 = vmatpush.msra.mxu1 %v421_v23  ;;  %v613_v48 = vld [vmem:[#allocation8 + $0x88] sm:$0xff]  ;;  %v612_v49 = vld [vmem:[#allocation8 + $0x80] sm:$0xff]  ;;  %v610_v51 = vld [vmem:[#allocation8 + $0x78] sm:$0xff] }
  0x4b   : > { %546 = vmatpush.msrb.mxu0 %v521_v26  ;;  %v609_v52 = vld [vmem:[#allocation8 + $0x70] sm:$0xff]  ;;  %v608_v57 = vld [vmem:[#allocation8 + $0x68] sm:$0xff]  ;;  %v607_v60 = vld [vmem:[#allocation8 + $0x60] sm:$0xff] }
  0x4c   : > { %477 = vmatpush.msra.mxu2 %v411_v19  ;;  %448 = vmatpush.msra.mxu1 %v420_v25  ;;  %v990_v56 = vld [vmem:[%s1466_s3] ss:$0 sm:$0xff]  ;;  %v606_v62 = vld [vmem:[#allocation8 + $0x58] sm:$0xff]  ;;  %v604_v8 = vld [vmem:[#allocation8 + $0x48] sm:$0xff] }
  0x4d   : > { %547 = vmatpush.msrb.mxu0 %v520_v28  ;;  %v991_v59 = vld [vmem:[%s1467_s4] ss:$0 sm:$0xff]  ;;  %v713_v13 = vld [vmem:[#allocation8 + $0x178] sm:$0xff]  ;;  %v711_v17 = vld [vmem:[#allocation8 + $0x168] sm:$0xff] }
  0x4e   : > { %478 = vmatpush.msra.mxu2 %v410_v21  ;;  %449 = vmatpush.msra.mxu1 %v419_v27  ;;  %v712_v14 = vld [vmem:[#allocation8 + $0x170] sm:$0xff]  ;;  %v710_v18 = vld [vmem:[#allocation8 + $0x160] sm:$0xff]  ;;  %v709_v19 = vld [vmem:[#allocation8 + $0x158] sm:$0xff] }
  0x4f   : > { %890 = vmatmul.msk.f32.vlgmr.msra.gmra.mxu1 %vm427_vm1, %v376_v1  ;;  %548 = vmatpush.msrb.mxu0 %v519_v29  ;;  %v605_v1 = vld [vmem:[#allocation8 + $0x50] sm:$0xff]  ;;  %v707_v21 = vld [vmem:[#allocation8 + $0x148] sm:$0xff]  ;;  %v602_v22 = vld [vmem:[#allocation8 + $0x38] sm:$0xff] }
  0x50   : > { %628 = vmatpush.msrb.mxu1 %v627_v30  ;;  %651 = vmatpush.msrb.mxu2 %v610_v51  ;;  %v708_v20 = vld [vmem:[#allocation8 + $0x150] sm:$0xff]  ;;  %v705_v24 = vld [vmem:[#allocation8 + $0x138] sm:$0xff]  ;;  %v600_v25 = vld [vmem:[#allocation8 + $0x28] sm:$0xff] }
  0x51   : > { %v601_v23 = vld [vmem:[#allocation8 + $0x30] sm:$0xff]  ;;  %v598_v27 = vld [vmem:[#allocation8 + $0x18] sm:$0xff]  ;;  %v702_v28 = vld [vmem:[#allocation8 + $0x120] sm:$0xff] }
  0x52   : > { %629 = vmatpush.msrb.mxu1 %v626_v31  ;;  %652 = vmatpush.msrb.mxu2 %v609_v52  ;;  %v704_v26 = vld [vmem:[#allocation8 + $0x130] sm:$0xff]  ;;  %v701_v30 = vld [vmem:[#allocation8 + $0x118] sm:$0xff]  ;;  %v596_v31 = vld [vmem:[#allocation8 + $0x8] sm:$0xff] }
  0x53   : > { %v597_v29 = vld [vmem:[#allocation8 + $0x10] sm:$0xff] }
  0x54   : > { %630 = vmatpush.msrb.mxu1 %v625_v32  ;;  %653 = vmatpush.msrb.mxu2 %v608_v57  ;;  %v700_v32 = vld [vmem:[#allocation8 + $0x110] sm:$0xff] }
  0x56   : > { %631 = vmatpush.msrb.mxu1 %v624_v33  ;;  %654 = vmatpush.msrb.mxu2 %v607_v60  ;;  %v595_v33 = vld [vmem:[#allocation8] sm:$0xff] }
  0x57   : > { %891 = vmatmul.msk.f32.gmra.mxu1 %vm427_vm1, %v1381_v0 }
  0x58   : > { %632 = vmatpush.msrb.mxu1 %v623_v34  ;;  %655 = vmatpush.msrb.mxu2 %v606_v62  ;;  %v699_v34 = vld [vmem:[#allocation8 + $0x108] sm:$0xff] }
  0x5a   : > { %633 = vmatpush.msrb.mxu1 %v622_v35  ;;  %656 = vmatpush.msrb.mxu2 %v605_v1  ;;  %v698_v35 = vld [vmem:[#allocation8 + $0x100] sm:$0xff] }
  0x5c   : > { %634 = vmatpush.msrb.mxu1 %v621_v36  ;;  %657 = vmatpush.msrb.mxu2 %v604_v8 }
  0x5e   : > { %635 = vmatpush.msrb.mxu1 %v620_v37 }
  0x60   : > { %636 = vmatpush.msrb.mxu1 %v619_v38 }
  0x62   : > { %637 = vmatpush.msrb.mxu1 %v618_v39 }
  0x64   : > { %638 = vmatpush.msrb.mxu1 %v617_v44  ;;  %v992_v44 = vld [vmem:[%s1469_s6] ss:$0 sm:$0xff] }
  0x66   : > { %639 = vmatpush.msrb.mxu1 %v616_v45 }
  0x68   : > { %640 = vmatpush.msrb.mxu1 %v615_v46  ;;  %v993_v46 = vld [vmem:[%s1470_s7] ss:$0 sm:$0xff] }
  0x6a   : > { %641 = vmatpush.msrb.mxu1 %v614_v47 }
  0x6c   : > { %642 = vmatpush.msrb.mxu1 %v613_v48 }
  0x6e   : > { %643 = vmatpush.msrb.mxu1 %v612_v49 }
  0xbc   : > { %v404_v40 = vpop.f32.mrf.mxu0 }
  0xbd   : > { %892 = vmatmul.msk.f32.vlgmr.msra.gmra.mxu2 %vm427_vm1, %v404_v40 }
  0xc2   : > { %v512_v41 = vpop.f32.mrf.mxu3 }
  0xc3   : > { %896 = vmatmul.msk.f32.vlgmr.msrb.gmra.mxu0 %vm427_vm1, %v512_v41 }
  0xc4   : > { %v407_v42 = vpop.f32.mrf.mxu0 }
  0xc5   : > { %893 = vmatmul.msk.f32.gmra.mxu2 %vm427_vm1, %v407_v42 }
  0xca   : > { %v515_v43 = vpop.f32.mrf.mxu3 }
  0xcb   : > { %897 = vmatmul.msk.f32.gmra.mxu0 %vm427_vm1, %v515_v43 }
  0xcc   : > { %v451_v50 = vpop.f32.mrf.mxu1 }
  0xd4   : > { %v454_v63 = vpop.f32.mrf.mxu1 }
 0x140   : > { %v480_v53 = vpop.f32.mrf.mxu2  ;;  %v550_v54 = vpop.f32.mrf.mxu0 }
 0x141   : > { %v481_v55 = vadd.f32 %v480_v53, %v451_v50 }
 0x143   : > { %v556_v58 = vadd.f32 %v550_v54, %v481_v55 }
 0x145   : > { %v562_v61 = vmul.f32 %v990_v56, %v556_v58 }
 0x147   : > { %v568_v0 = vadd.f32 %v991_v59, %v562_v61 }
 0x148   : > { %v483_v4 = vpop.f32.mrf.mxu2  ;;  %v553_v5 = vpop.f32.mrf.mxu0 }
 0x149   : > { %v484_v6 = vadd.f32 %v483_v4, %v454_v63  ;;  %v570_v7 = vmax.f32 %v568_v0, 0.0 }
 0x14b   : > { %v557_v9 = vadd.f32 %v553_v5, %v484_v6  ;;  %644 = vmatmul.f32.vlgmr.msrb.gmra.mxu1 %v570_v7 }
 0x14d   : > { %v563_v10 = vmul.f32 %v990_v56, %v557_v9 }
 0x14f   : > { %v569_v11 = vadd.f32 %v991_v59, %v563_v10 }
 0x151   : > { %v571_v12 = vmax.f32 %v569_v11, 0.0 }
 0x153   : > { %586 = vmatpush.msrb.mxu3 %v571_v12  ;;  %647 = vmatmul.f32.gmra.mxu1 %v571_v12 }
 0x154   : > { %688 = vmatpush.msra.mxu0 %v571_v12 }
 0x155   : > { %587 = vmatpush.msrb.mxu3 %v570_v7 }
 0x156   : > { %689 = vmatpush.msra.mxu0 %v570_v7  ;;  %898 = vmatmul.msk.f32.vlgmr.msrb.gmra.mxu3 %vm380_vm0, %v1385_v2  ;;  %v603_v2 = vld [vmem:[#allocation8 + $0x40] sm:$0xff] }
 0x157   : > { %900 = vmatmul.msk.f32.vlgmr.msra.gmra.mxu0 %vm380_vm0, %v1387_v3  ;;  %714 = vmatpush.msra.mxu3 %v713_v13  ;;  %v706_v3 = vld [vmem:[#allocation8 + $0x140] sm:$0xff] }
 0x158   : > { %658 = vmatpush.msrb.mxu2 %v603_v2 }
 0x159   : > { %715 = vmatpush.msra.mxu3 %v712_v14 }
 0x15a   : > { %659 = vmatpush.msrb.mxu2 %v602_v22 }
 0x15b   : > { %716 = vmatpush.msra.mxu3 %v711_v17 }
 0x15c   : > { %660 = vmatpush.msrb.mxu2 %v601_v23 }
 0x15d   : > { %717 = vmatpush.msra.mxu3 %v710_v18 }
 0x15e   : > { %899 = vmatmul.msk.f32.gmra.mxu3 %vm380_vm0, %v1393_v15  ;;  %661 = vmatpush.msrb.mxu2 %v600_v25  ;;  %v599_v15 = vld [vmem:[#allocation8 + $0x20] sm:$0xff] }
 0x15f   : > { %901 = vmatmul.msk.f32.gmra.mxu0 %vm380_vm0, %v1395_v16  ;;  %718 = vmatpush.msra.mxu3 %v709_v19  ;;  %v703_v16 = vld [vmem:[#allocation8 + $0x128] sm:$0xff] }
 0x160   : > { %662 = vmatpush.msrb.mxu2 %v599_v15 }
 0x161   : > { %719 = vmatpush.msra.mxu3 %v708_v20 }
 0x162   : > { %663 = vmatpush.msrb.mxu2 %v598_v27 }
 0x163   : > { %720 = vmatpush.msra.mxu3 %v707_v21 }
 0x164   : > { %664 = vmatpush.msrb.mxu2 %v597_v29 }
 0x165   : > { %721 = vmatpush.msra.mxu3 %v706_v3 }
 0x166   : > { %665 = vmatpush.msrb.mxu2 %v596_v31 }
 0x167   : > { %722 = vmatpush.msra.mxu3 %v705_v24 }
 0x168   : > { %666 = vmatpush.msrb.mxu2 %v595_v33 }
 0x169   : > { %723 = vmatpush.msra.mxu3 %v704_v26 }
 0x16b   : > { %724 = vmatpush.msra.mxu3 %v703_v16 }
 0x16d   : > { %725 = vmatpush.msra.mxu3 %v702_v28 }
 0x16f   : > { %726 = vmatpush.msra.mxu3 %v701_v30 }
 0x171   : > { %727 = vmatpush.msra.mxu3 %v700_v32 }
 0x173   : > { %728 = vmatpush.msra.mxu3 %v699_v34 }
 0x175   : > { %729 = vmatpush.msra.mxu3 %v698_v35 }
 0x1c8   : > { %v645_v40 = vpop.f32.mrf.mxu1 }
 0x1d0   : > { %v648_v48 = vpop.f32.mrf.mxu1 }
 0x1d4   : > { %v691_v36 = vpop.f32.mrf.mxu0 }
 0x1d5   : > { %730 = vmatmul.f32.vlgmr.msra.gmra.mxu3 %v691_v36 }
 0x1d9   : > { %v589_v37 = vpop.f32.mrf.mxu3 }
 0x1da   : > { %667 = vmatmul.f32.vlgmr.msrb.gmra.mxu2 %v589_v37 }
 0x1dc   : > { %v694_v38 = vpop.f32.mrf.mxu0 }
 0x1dd   : > { %733 = vmatmul.f32.gmra.mxu3 %v694_v38 }
 0x1e1   : > { %v592_v39 = vpop.f32.mrf.mxu3 }
 0x1e2   : > { %670 = vmatmul.f32.gmra.mxu2 %v592_v39 }
 0x258   : > { %v731_v41 = vpop.f32.mrf.mxu3 }
 0x25d   : > { %v668_v42 = vpop.f32.mrf.mxu2 }
 0x25e   : > { %v669_v43 = vadd.f32 %v668_v42, %v645_v40 }
 0x260   : > { %v737_v45 = vadd.f32 %v731_v41, %v669_v43  ;;  %v734_v51 = vpop.f32.mrf.mxu3 }
 0x262   : > { %v743_v47 = vmul.f32 %v992_v44, %v737_v45 }
 0x264   : > { %v749_v49 = vadd.f32 %v993_v46, %v743_v47 }
 0x265   : > { %v671_v50 = vpop.f32.mrf.mxu2 }
 0x266   : > { %v751_v52 = vmax.f32 %v749_v49, 0.0  ;;  %v672_v53 = vadd.f32 %v671_v50, %v648_v48 }
 0x268   : > { %753 = vst [vmem:[%s375_s13] sm:$0xff] %v751_v52  ;;  %v738_v54 = vadd.f32 %v734_v51, %v672_v53 }
 0x26a   : > { %v744_v55 = vmul.f32 %v992_v44, %v738_v54 }
 0x26c   : > { %v750_v56 = vadd.f32 %v993_v46, %v744_v55 }
 0x26e   : > { %v752_v57 = vmax.f32 %v750_v56, 0.0 }
 0x270   : > { %754 = vst [vmem:[%s375_s13 + $0x8] sm:$0xff] %v752_v57 }
 0x271   : > { %1141 = shalt.err (!%p1138_p10)
}
 0x272   : > { %s1195_s19 = smov 128   ;;  %s1196_s14 = smov 8  }
 0x273   : > { %923 = dma.vmem_to_hbm [thread:$0]  (%p1333_p3), %s769_s11, 256, %s771_s16, %s756_s9, %s1195_s19, %s1195_s19, %s1196_s14  }
 0x274 PF: > { %s785_s26 = sand.u32 1, %s1176_s27   ;;  %p1486_p12 = scmp.ge.s32.totalorder %s1188_s30, 2 }
 0x275   : > { %s786_s20 = scalar_lea.sflag [#allocation4], %s785_s26 }
 0x276   : > { %p940_p13 = pnand %p1486_p12, %p1277_p6 }
 0x278   : > { %p941_p0 = pneg %p940_p13 }
 0x27a   : > { %1171 = dma.done.wait (%p941_p0), %s786_s20, 256  }
 0x27b   : > { %1173 = vsyncadd (%p941_p0), %s786_s20, 4294967040  ;;  %p23_p5 = scmp.ge.s32.totalorder %s1315_s18, 4   ;;  %s1487_s27 = smov %s1180_s28 }
 0x27c   : > { %s1488_s28 = smov %s1184_s29  ;;  %s1489_s29 = smov %s1329_s25 }
 0x27d   : > { %s1490_s30 = smov %s1315_s18  ;;  %25 = sbr.rel (!%p23_p5) target bundleno = 10 (0xa), region = 114 }
 0x282   :  { %792 = vsyncpa [#allocation3], 1 }
 0x283   :  { %794 = vsyncpa [#allocation3 + $0x1], 1 }
 0x284   :  { %795 = vsyncpa [#allocation6], 1 }
 0x285   :  { %796 = vsyncpa [#allocation9], 1 }
 0x286   :  { %797 = vsyncpa [#allocation4], 1 }
 0x287   :  { %799 = vsyncpa [#allocation4 + $0x1], 1 }

</bundles_post_ra>
